<compile_context>
chip_gen: v6e
topology: v6e:2x2x1
jax: 0.10.0
libtpu: 0.0.40
codegen_flags: <defaults>
</compile_context>

<pallas_src>
import functools

import jax
import jax.numpy as jnp
import numpy as np
from jax.experimental import pallas as pl
from jax.experimental.pallas import tpu as pltpu


def _round_up(x, m):
    return (x + m - 1) // m * m


def _grid_points(grid_min, grid_max, num_grids):
    # Same linspace the PyTorch module stores in its frozen `grid` parameter.
    return np.linspace(grid_min, grid_max, num_grids, dtype=np.float32)


def pack_spline_weight(spline_weight, matmul_dtype=jnp.bfloat16):
    """(I, G, O) -> (K_pad, O_pad) packed MXU operand.

    Row g*I + i holds W[i, g, :].  K = G*I is zero-padded up to a multiple of
    128 and O is lane-padded up to a multiple of 128.  Do this ONCE at
    parameter load, not per forward call.
    """
    I, G, O = spline_weight.shape
    gi = G * I
    k_pad = _round_up(gi, 128)
    o_pad = _round_up(max(O, 128), 128)
    w = jnp.transpose(spline_weight, (1, 0, 2)).reshape(gi, O)
    w = jnp.pad(w, ((0, k_pad - gi), (0, o_pad - O)))
    return w.astype(matmul_dtype)


def _rbf_linear_kernel(x_ref, g_ref, w_ref, o_ref, basis_ref, *,
                       inv_h, num_grids, gi, exp_dtype):
    # x_ref:     VMEM (TB, I)        f32
    # g_ref:     VMEM (1, G*I)       f32   scaled grid points, each repeated I times
    # w_ref:     VMEM (K_pad, TO)    matmul dtype
    # o_ref:     VMEM (TB, TO)       out dtype
    # basis_ref: VMEM (TB, K_pad)    matmul dtype scratch (persists across O tiles)

    # Basis is computed once per batch tile (first O tile only) and reused.
    @pl.when(pl.program_id(1) == 0)
    def _():
        xs = x_ref[...] * inv_h                              # (TB, I), one VPU mul
        # Lane-dense replication: column g*I + i holds xs[:, i].
        xs_t = jnp.concatenate([xs] * num_grids, axis=1)     # (TB, G*I)
        z = (xs_t - g_ref[...]).astype(exp_dtype)            # (x - grid_g)/h
        slab = jnp.exp(-(z * z)).astype(basis_ref.dtype)     # ONE full-width exp
        if basis_ref.shape[1] == gi:
            basis_ref[...] = slab                            # one unmasked store
        else:
            basis_ref[:, :gi] = slab
            # Zero the K-padding columns: never feed stale VMEM (possible NaNs)
            # into the f32 accumulation, even against zero weight rows.
            basis_ref[:, gi:] = jnp.zeros(
                (basis_ref.shape[0], basis_ref.shape[1] - gi), basis_ref.dtype)

    # Single fused MXU matmul, K = K_pad, f32 accumulation.
    o_ref[...] = jnp.dot(basis_ref[...], w_ref[...],
                         preferred_element_type=jnp.float32).astype(o_ref.dtype)


def rbf_linear(x, packed_weight, *, num_grids, out_features,
               grid_min=-2.0, grid_max=2.0, block_b=512,
               o_tile_budget_bytes=16 << 20,
               exp_dtype=jnp.float32, out_dtype=jnp.float32):
    """x: (B, I) f32; packed_weight: pack_spline_weight(...). Returns (B, O)."""
    B, I = x.shape
    gi = num_grids * I
    k_pad, o_pad = packed_weight.shape
    assert k_pad == _round_up(gi, 128), (k_pad, gi)
    assert o_pad % 128 == 0 and o_pad >= out_features, (o_pad, out_features)

    h = (grid_max - grid_min) / (num_grids - 1)
    inv_h = 1.0 / h
    grid_pts = _grid_points(grid_min, grid_max, num_grids)
    # (1, G*I): scaled grid point g repeated I times -> matches weight packing.
    grid_row = jnp.asarray(np.repeat(grid_pts * inv_h, I)[None, :], jnp.float32)

    # --- batch tiling: ~block_b rows, multiple of 16 (bf16 sublane packing),
    # derived from B so the last tile is not mostly padding; >=2 tiles for
    # large B so a v7x megacore has something to shard across its 2 TCs.
    n_b = max(1, -(-B // block_b))
    if B >= 256:
        n_b = max(n_b, 2)
    tb = max(16, _round_up(-(-B // n_b), 16))
    b_pad = tb * n_b

    xp = x.astype(jnp.float32)
    if b_pad != B:
        xp = jnp.pad(xp, ((0, b_pad - B), (0, 0)))

    # --- O tiling: keep the resident weight tile under the budget (v7x has
    # only 64 MiB VMEM per TC); pick the largest 128-multiple tile dividing
    # O_pad that fits.  Usually n_o == 1 (weight fully resident).
    w_itemsize = jnp.dtype(packed_weight.dtype).itemsize
    n_o, to = 1, o_pad
    for cand in range(1, o_pad // 128 + 1):
        if o_pad % cand:
            continue
        t = o_pad // cand
        if t % 128:
            continue
        n_o, to = cand, t
        if k_pad * t * w_itemsize <= o_tile_budget_bytes:
            break

    # --- explicit VMEM budget from the real footprint (+50% headroom).
    out_itemsize = jnp.dtype(out_dtype).itemsize
    footprint = (2 * k_pad * to * w_itemsize        # weight tiles (double-buffered)
                 + tb * k_pad * w_itemsize          # basis scratch
                 + 2 * tb * I * 4                   # x tiles
                 + 2 * tb * to * out_itemsize       # out tiles
                 + 2 * gi * 4)                      # grid-row constant
    vmem_limit = min(64 << 20, max(32 << 20, int(footprint * 1.5) + (1 << 20)))

    kernel = functools.partial(
        _rbf_linear_kernel,
        inv_h=inv_h, num_grids=num_grids, gi=gi, exp_dtype=exp_dtype)

    out = pl.pallas_call(
        kernel,
        out_shape=jax.ShapeDtypeStruct((b_pad, o_pad), out_dtype),
        grid_spec=pltpu.PrefetchScalarGridSpec(
            num_scalar_prefetch=0,
            grid=(b_pad // tb, n_o),
            in_specs=[
                pl.BlockSpec((tb, I), lambda b, o: (b, 0)),        # x batch tile
                pl.BlockSpec((1, gi), lambda b, o: (0, 0)),        # scaled grid row
                pl.BlockSpec((k_pad, to), lambda b, o: (0, o)),    # weight tile
            ],
            out_specs=pl.BlockSpec((tb, to), lambda b, o: (b, o)),
            scratch_shapes=[pltpu.VMEM((tb, k_pad), packed_weight.dtype)],
        ),
        compiler_params=pltpu.CompilerParams(
            # Batch axis is embarrassingly parallel (v7x shards it across its
            # 2 TCs); O axis reuses the basis scratch so it must be arbitrary.
            dimension_semantics=("parallel", "arbitrary"),
            vmem_limit_bytes=vmem_limit,
        ),
    )(xp, grid_row, packed_weight)
    return out[:B, :out_features]


def rbf_linear_ref(x, spline_weight, grid_min=-2.0, grid_max=2.0):
    """Pure-JAX reference matching the PyTorch forward exactly."""
    _, G, _ = spline_weight.shape
    h = (grid_max - grid_min) / (G - 1)
    grid = jnp.asarray(_grid_points(grid_min, grid_max, G))
    basis = jnp.exp(-(((x[..., None] - grid) / h) ** 2))      # (B, I, G)
    return jnp.einsum('bid,ido->bo', basis, spline_weight)    # (B, O)


if __name__ == "__main__":
    # Module hyperparameters (small, consistent with RBFLinear.__init__).
    in_features = 32
    out_features = 16
    num_grids = 8
    grid_min, grid_max = -2.0, 2.0
    spline_weight_init_scale = 0.1
    batch = 8

    key = jax.random.PRNGKey(0)
    kx, kw = jax.random.split(key)

    spline_weight = (jax.random.normal(
        kw, (in_features, num_grids, out_features), dtype=jnp.float32)
        * spline_weight_init_scale)
    x = jax.random.normal(kx, (batch, in_features), dtype=jnp.float32)

    y_ref = rbf_linear_ref(x, spline_weight, grid_min, grid_max)

    # Exact-semantics validation path: f32 packed weight, f32 basis, f32 out.
    w_f32 = pack_spline_weight(spline_weight, matmul_dtype=jnp.float32)
    y_f32 = rbf_linear(x, w_f32, num_grids=num_grids, out_features=out_features,
                       grid_min=grid_min, grid_max=grid_max)
    jax.block_until_ready(y_f32)
    assert y_f32.shape == (batch, out_features)
    err_f32 = float(jnp.max(jnp.abs(y_f32 - y_ref)))
    assert err_f32 < 1e-4, f"f32 path max err {err_f32}"

    # Fast path: bf16 weight + bf16 basis scratch (f32 MXU accumulation),
    # bf16 lane-dense output (HBM writeback halved).
    w_bf16 = pack_spline_weight(spline_weight, matmul_dtype=jnp.bfloat16)
    y_bf16 = rbf_linear(x, w_bf16, num_grids=num_grids, out_features=out_features,
                        grid_min=grid_min, grid_max=grid_max,
                        out_dtype=jnp.bfloat16)
    jax.block_until_ready(y_bf16)
    assert y_bf16.shape == (batch, out_features)
    err_bf16 = float(jnp.max(jnp.abs(y_bf16.astype(jnp.float32) - y_ref)))
    assert err_bf16 < 1e-1, f"bf16 path max err {err_bf16}"

    print("KERNEL_OK")
</pallas_src>

<mosaic_0001>
module attributes {stable_mosaic.version = 11 : i64} {
  func.func @_rbf_linear_kernel(%arg0: i32, %arg1: i32, %arg2: memref<16x32xf32, #tpu.memory_space<vmem>>, %arg3: memref<1x256xf32, #tpu.memory_space<vmem>>, %arg4: memref<256x128xf32, #tpu.memory_space<vmem>>, %arg5: memref<16x128xf32, #tpu.memory_space<vmem>>, %arg6: memref<16x256xf32, #tpu.memory_space<vmem>>) attributes {dimension_semantics = [#tpu.dimension_semantics<parallel>, #tpu.dimension_semantics<arbitrary>], iteration_bounds = array<i64: 1, 1>, scalar_prefetch = 0 : i64, scratch_operands = 1 : i64, tpu.core_type = #tpu.core_type<tc>, window_params = [{transform_indices = @transform_0, window_bounds = array<i64: 16, 32>}, {pipeline_mode = #tpu.pipeline_mode<synchronous>, transform_indices = @transform_1, window_bounds = array<i64: 1, 256>}, {transform_indices = @transform_2, window_bounds = array<i64: 256, 128>}, {transform_indices = @transform_3, window_bounds = array<i64: 16, 128>}]} {
    %c0_i32 = arith.constant 0 : i32
    %0 = arith.cmpi eq, %arg1, %c0_i32 : i32
    %1 = arith.extui %0 : i1 to i32
    %c0_i32_0 = arith.constant 0 : i32
    %2 = arith.cmpi ne, %1, %c0_i32_0 : i32
    scf.if %2 {
      %c0_6 = arith.constant 0 : index
      %c0_7 = arith.constant 0 : index
      %7 = vector.load %arg2[%c0_6, %c0_7] : memref<16x32xf32, #tpu.memory_space<vmem>>, vector<16x32xf32>
      %cst_8 = arith.constant 1.750000e+00 : f32
      %8 = vector.broadcast %cst_8 : f32 to vector<16x32xf32>
      %9 = arith.mulf %7, %8 : vector<16x32xf32>
      %10 = tpu.concatenate %9, %9, %9, %9, %9, %9, %9, %9 in 1 : vector<16x32xf32>, vector<16x32xf32>, vector<16x32xf32>, vector<16x32xf32>, vector<16x32xf32>, vector<16x32xf32>, vector<16x32xf32>, vector<16x32xf32> -> vector<16x256xf32>
      %c0_9 = arith.constant 0 : index
      %c0_10 = arith.constant 0 : index
      %11 = vector.load %arg3[%c0_9, %c0_10] : memref<1x256xf32, #tpu.memory_space<vmem>>, vector<1x256xf32>
      %12 = vector.broadcast %11 : vector<1x256xf32> to vector<16x256xf32>
      %13 = arith.subf %10, %12 : vector<16x256xf32>
      %14 = arith.mulf %13, %13 : vector<16x256xf32>
      %cst_11 = arith.constant 0.000000e+00 : f32
      %15 = vector.broadcast %cst_11 : f32 to vector<16x256xf32>
      %16 = arith.subf %15, %14 : vector<16x256xf32>
      %17 = math.exp %16 : vector<16x256xf32>
      %c0_12 = arith.constant 0 : index
      %c0_13 = arith.constant 0 : index
      %18 = vector.load %arg6[%c0_12, %c0_13] : memref<16x256xf32, #tpu.memory_space<vmem>>, vector<16x256xf32>
      tpu.vector_store %arg6[%c0_12, %c0_13], %17 {strides = array<i32>} : memref<16x256xf32, #tpu.memory_space<vmem>>, vector<16x256xf32>,
    } else {
    }
    %c0 = arith.constant 0 : index
    %c0_1 = arith.constant 0 : index
    %3 = vector.load %arg6[%c0, %c0_1] : memref<16x256xf32, #tpu.memory_space<vmem>>, vector<16x256xf32>
    %c0_2 = arith.constant 0 : index
    %c0_3 = arith.constant 0 : index
    %4 = vector.load %arg4[%c0_2, %c0_3] : memref<256x128xf32, #tpu.memory_space<vmem>>, vector<256x128xf32>
    %cst = arith.constant dense<0.000000e+00> : vector<16x128xf32>
    %5 = tpu.matmul %3, %4, %cst {dimension_numbers = #tpu.dot_dimension_numbers<[1], [0], [0], [1], [0, 0, 1, 1], [], []>} : vector<16x256xf32>, vector<256x128xf32>, vector<16x128xf32> -> vector<16x128xf32>
    %c0_4 = arith.constant 0 : index
    %c0_5 = arith.constant 0 : index
    %6 = vector.load %arg5[%c0_4, %c0_5] : memref<16x128xf32, #tpu.memory_space<vmem>>, vector<16x128xf32>
    tpu.vector_store %arg5[%c0_4, %c0_5], %5 {strides = array<i32>} : memref<16x128xf32, #tpu.memory_space<vmem>>, vector<16x128xf32>,
    return
  }
  func.func @transform_0(%arg0: i32, %arg1: i32) -> (i32, i32) {
    %c0_i32 = arith.constant 0 : i32
    %c0_i32_0 = arith.constant 0 : i32
    return %arg0, %c0_i32 : i32, i32
  }
  func.func @transform_1(%arg0: i32, %arg1: i32) -> (i32, i32) {
    %c0_i32 = arith.constant 0 : i32
    %c0_i32_0 = arith.constant 0 : i32
    %c0_i32_1 = arith.constant 0 : i32
    return %c0_i32, %c0_i32_0 : i32, i32
  }
  func.func @transform_2(%arg0: i32, %arg1: i32) -> (i32, i32) {
    %c0_i32 = arith.constant 0 : i32
    %c0_i32_0 = arith.constant 0 : i32
    return %c0_i32, %arg1 : i32, i32
  }
  func.func @transform_3(%arg0: i32, %arg1: i32) -> (i32, i32) {
    %c0_i32 = arith.constant 0 : i32
    return %arg0, %arg1 : i32, i32
  }
}

</mosaic_0001>

<bundles_post_ra>
// kernel: tpu_custom_call.1
= control target key start
LH: loop header
LB: loop body
LE: loop exit
PB: predicated region body
PF: predicated region fallthrough
CT: control target
= control target key end

     0   :  { %8 = vsyncpa [#allocation4], 0  ;;  %s493_s0 = inlined_call_operand.hbm [shape: f32[16,32], index: 0, kind: input, shape index: {}]   ;;  %s494_s1 = inlined_call_operand.hbm [shape: f32[1,256], index: 1, kind: input, shape index: {}]   ;;  %s495_s2 = inlined_call_operand.hbm [shape: f32[256,128], index: 2, kind: input, shape index: {}]   ;;  %s496_s3 = inlined_call_operand.hbm [shape: f32[16,128], index: 3, kind: output, shape index: {}]  }
   0x1   :  { %9 = vsyncpa [#allocation7], 0 }
   0x2   :  { %10 = vsyncpa [#allocation5], 0  ;;  %s431_s12 = smov [#allocation6]   ;;  %s432_s14 = smov [#allocation3]  }
   0x3   :  { %s29_s13 = sshll.u32 %s431_s12, 4  ;;  %s16_s15 = sshll.u32 %s432_s14, 4  ;;  %s30_s13 = int_to_ptr.vmem [resolvable:$true] %s29_s13  ;;  %s17_s15 = int_to_ptr.vmem [resolvable:$true] %s16_s15 }
   0x4   :  { %s353_s16 = scalar_lea.vmem %s30_s13, 32  ;;  %p358_p1 = scmp.lt.s32.totalorder %s30_s13, %s30_s13 }
   0x5   :  { %p354_p0 = scmp.ne.s32.totalorder %s30_s13, %s353_s16  ;;  %p359_p2 = scmp.lt.s32.totalorder %s353_s16, %s353_s16 }
   0x7   :  { %p360_p3 = por %p359_p2, %p358_p1 }
   0x9   :  { %p361_p4 = pnand %p360_p3, %p354_p0 }
   0xb   :  { %364 = shalt.err (!%p361_p4)
}
   0xc   :  { %32 = dma.hbm_to_vmem [thread:$0]  %s494_s1, 32, %s30_s13, [#allocation7]  }
   0xd   :  { %s373_s19 = scalar_lea.vmem %s17_s15, 256  ;;  %p378_p6 = scmp.lt.s32.totalorder %s17_s15, %s17_s15 }
   0xe   :  { %p374_p5 = scmp.ne.s32.totalorder %s17_s15, %s373_s19  ;;  %p379_p7 = scmp.lt.s32.totalorder %s373_s19, %s373_s19 }
  0x10   :  { %p380_p8 = por %p379_p7, %p378_p6 }
  0x12   :  { %p381_p9 = pnand %p380_p8, %p374_p5 }
  0x14   :  { %384 = shalt.err (!%p381_p9)
}
  0x15   :  { %s433_s20 = smov 128   ;;  %s434_s21 = smov 8  }
  0x16   :  { %22 = dma.hbm_to_vmem [thread:$0]  %s493_s0, 256, %s17_s15, [#allocation4], %s433_s20, %s433_s20, %s434_s21  }
  0x17   :  { %s435_s24 = smov [#allocation8]  }
  0x18   :  { %s38_s25 = sshll.u32 %s435_s24, 4  ;;  %s39_s25 = int_to_ptr.vmem [resolvable:$true] %s38_s25 }
  0x19   :  { %s393_s1 = scalar_lea.vmem %s39_s25, 4096  ;;  %p398_p11 = scmp.lt.s32.totalorder %s39_s25, %s39_s25 }
  0x1a   :  { %p394_p10 = scmp.ne.s32.totalorder %s39_s25, %s393_s1  ;;  %p399_p12 = scmp.lt.s32.totalorder %s393_s1, %s393_s1 }
  0x1c   :  { %p400_p13 = por %p399_p12, %p398_p11 }
  0x1e   :  { %p401_p0 = pnand %p400_p13, %p394_p10 }
  0x20   :  { %404 = shalt.err (!%p401_p0)
}
  0x21   :  { %44 = dma.hbm_to_vmem [thread:$0]  %s495_s2, 4096, %s39_s25, [#allocation7], %s433_s20, %s433_s20, %s434_s21  }
  0x22   :  { %425 = dma.done.wait [#allocation4], 256  }
  0x23   :  { %426 = vsyncadd [#allocation4], 4294967040 }
  0x24   :  { %427 = dma.done.wait [#allocation7], 4128  }
  0x25   :  { %428 = vsyncadd [#allocation7], 4294963168  ;;  %v58_v0 = vld [vmem:[#allocation3] sm:$0xff]  ;;  %v59_v1 = vld [vmem:[#allocation3 + $0x8] sm:$0xff]  ;;  %s436_s0 = smov 64   ;;  %s437_s2 = smov 32   ;;  %v93_v36 = vlaneseq }
  0x26   :  { %v162_v2 = vld [vmem:[#allocation8 + $0xf8] sm:$0xff]  ;;  %v475_v3 = vmul.f32 1.75, %v58_v0  ;;  %v161_v5 = vld [vmem:[#allocation8 + $0xf0] sm:$0xff]  ;;  %v479_v7 = vmul.f32 1.75, %v59_v1  ;;  %v160_v8 = vld [vmem:[#allocation8 + $0xe8] sm:$0xff]  ;;  %s438_s28 = smov 96  }
  0x27   :  { %258 = vmatprep.subr.mxu0 %v162_v2  ;;  %296 = vmatprep.subr.mxu1 %v162_v2  ;;  %v146_v4 = vld [vmem:[#allocation8 + $0x78] sm:$0xff]  ;;  %v145_v6 = vld [vmem:[#allocation8 + $0x70] sm:$0xff]  ;;  %v144_v9 = vld [vmem:[#allocation8 + $0x68] sm:$0xff]  ;;  %v94_v37 = vshrl.u32 %v93_v36, 7  ;;  %vm82_vm0 = vcmask 261120   ;;  %vm85_vm1 = vcmask 523264  }
  0x28   :  { %259 = vmatpush3.msra.mxu0 %v146_v4  ;;  %312 = vmatpush3.msra.mxu1 %v146_v4  ;;  %v159_v10 = vld [vmem:[#allocation8 + $0xe0] sm:$0xff]  ;;  %v158_v12 = vld [vmem:[#allocation8 + $0xd8] sm:$0xff]  ;;  %v157_v14 = vld [vmem:[#allocation8 + $0xd0] sm:$0xff]  ;;  %vm88_vm2 = vcmask 785408   ;;  %s439_s29 = smov [#allocation9]  }
  0x29   :  { %70 = vrot.lane.b32.xlu1 %v475_v3, %s436_s0  ;;  %64 = vrot.lane.b32.xlu0 %v475_v3, %s437_s2  ;;  %v143_v11 = vld [vmem:[#allocation8 + $0x60] sm:$0xff]  ;;  %v142_v13 = vld [vmem:[#allocation8 + $0x58] sm:$0xff]  ;;  %v141_v15 = vld [vmem:[#allocation8 + $0x50] sm:$0xff]  ;;  %v95_v40 = vsub.s32 0, %v94_v37  ;;  %v99_v41 = vsub.s32 1, %v94_v37  ;;  %s245_s30 = sshll.u32 %s439_s29, 4  ;;  %s246_s30 = int_to_ptr.vmem [resolvable:$true] %s245_s30 }
  0x2a   :  { %260 = vmatprep.subr.mxu0 %v161_v5  ;;  %297 = vmatprep.subr.mxu1 %v161_v5  ;;  %v156_v16 = vld [vmem:[#allocation8 + $0xc8] sm:$0xff]  ;;  %v155_v18 = vld [vmem:[#allocation8 + $0xc0] sm:$0xff]  ;;  %v154_v20 = vld [vmem:[#allocation8 + $0xb8] sm:$0xff]  ;;  %s405_s4 = scalar_lea.vmem %s246_s30, 256  ;;  %p410_p2 = scmp.lt.s32.totalorder %s246_s30, %s246_s30 }
  0x2b   :  { %261 = vmatpush3.msra.mxu0 %v145_v6  ;;  %313 = vmatpush3.msra.mxu1 %v145_v6  ;;  %v140_v17 = vld [vmem:[#allocation8 + $0x48] sm:$0xff]  ;;  %v139_v19 = vld [vmem:[#allocation8 + $0x40] sm:$0xff]  ;;  %v138_v21 = vld [vmem:[#allocation8 + $0x38] sm:$0xff]  ;;  %p406_p1 = scmp.ne.s32.totalorder %s246_s30, %s405_s4  ;;  %p411_p3 = scmp.lt.s32.totalorder %s405_s4, %s405_s4 }
  0x2c   :  { %262 = vmatprep.subr.mxu0 %v160_v8  ;;  %298 = vmatprep.subr.mxu1 %v160_v8  ;;  %v153_v22 = vld [vmem:[#allocation8 + $0xb0] sm:$0xff]  ;;  %v152_v24 = vld [vmem:[#allocation8 + $0xa8] sm:$0xff]  ;;  %v151_v26 = vld [vmem:[#allocation8 + $0xa0] sm:$0xff] }
  0x2d   :  { %72 = vrot.lane.b32.xlu1 %v479_v7, %s436_s0  ;;  %66 = vrot.lane.b32.xlu0 %v479_v7, %s437_s2  ;;  %v137_v23 = vld [vmem:[#allocation8 + $0x30] sm:$0xff]  ;;  %v136_v25 = vld [vmem:[#allocation8 + $0x28] sm:$0xff]  ;;  %v135_v27 = vld [vmem:[#allocation8 + $0x20] sm:$0xff]  ;;  %p412_p4 = por %p411_p3, %p410_p2 }
  0x2e   :  { %263 = vmatpush3.msra.mxu0 %v144_v9  ;;  %314 = vmatpush3.msra.mxu1 %v144_v9  ;;  %v150_v28 = vld [vmem:[#allocation8 + $0x98] sm:$0xff]  ;;  %v149_v30 = vld [vmem:[#allocation8 + $0x90] sm:$0xff]  ;;  %v148_v32 = vld [vmem:[#allocation8 + $0x88] sm:$0xff] }
  0x2f   :  { %264 = vmatprep.subr.mxu0 %v159_v10  ;;  %299 = vmatprep.subr.mxu1 %v159_v10  ;;  %v134_v29 = vld [vmem:[#allocation8 + $0x18] sm:$0xff]  ;;  %v133_v31 = vld [vmem:[#allocation8 + $0x10] sm:$0xff]  ;;  %v132_v33 = vld [vmem:[#allocation8 + $0x8] sm:$0xff]  ;;  %p413_p5 = pnand %p412_p4, %p406_p1 }
  0x30   :  { %265 = vmatpush3.msra.mxu0 %v143_v11  ;;  %315 = vmatpush3.msra.mxu1 %v143_v11  ;;  %v147_v34 = vld [vmem:[#allocation8 + $0x80] sm:$0xff]  ;;  %v91_v42 = vld [vmem:[#allocation6] sm:$0x3] }
  0x31   :  { %78 = vrot.lane.b32.xlu1 %v479_v7, %s438_s28  ;;  %76 = vrot.lane.b32.xlu0 %v475_v3, %s438_s28  ;;  %v131_v35 = vld [vmem:[#allocation8] sm:$0xff]  ;;  %v96_v47 = vrot.slane %v91_v42, %v95_v40  ;;  %v100_v48 = vrot.slane %v91_v42, %v99_v41 }
  0x32   :  { %266 = vmatprep.subr.mxu0 %v158_v12  ;;  %300 = vmatprep.subr.mxu1 %v158_v12 }
  0x33   :  { %267 = vmatpush3.msra.mxu0 %v142_v13  ;;  %316 = vmatpush3.msra.mxu1 %v142_v13 }
  0x34   :  { %268 = vmatprep.subr.mxu0 %v157_v14  ;;  %301 = vmatprep.subr.mxu1 %v157_v14 }
  0x35   :  { %269 = vmatpush3.msra.mxu0 %v141_v15  ;;  %317 = vmatpush3.msra.mxu1 %v141_v15 }
  0x36   :  { %270 = vmatprep.subr.mxu0 %v156_v16  ;;  %302 = vmatprep.subr.mxu1 %v156_v16 }
  0x37   :  { %271 = vmatpush3.msra.mxu0 %v140_v17  ;;  %318 = vmatpush3.msra.mxu1 %v140_v17 }
  0x38   :  { %272 = vmatprep.subr.mxu0 %v155_v18  ;;  %303 = vmatprep.subr.mxu1 %v155_v18 }
  0x39   :  { %273 = vmatpush3.msra.mxu0 %v139_v19  ;;  %319 = vmatpush3.msra.mxu1 %v139_v19 }
  0x3a   :  { %274 = vmatprep.subr.mxu0 %v154_v20  ;;  %304 = vmatprep.subr.mxu1 %v154_v20 }
  0x3b   :  { %275 = vmatpush3.msra.mxu0 %v138_v21  ;;  %320 = vmatpush3.msra.mxu1 %v138_v21 }
  0x3c   :  { %276 = vmatprep.subr.mxu0 %v153_v22  ;;  %305 = vmatprep.subr.mxu1 %v153_v22 }
  0x3d   :  { %277 = vmatpush3.msra.mxu0 %v137_v23  ;;  %321 = vmatpush3.msra.mxu1 %v137_v23 }
  0x3e   :  { %278 = vmatprep.subr.mxu0 %v152_v24  ;;  %306 = vmatprep.subr.mxu1 %v152_v24 }
  0x3f   :  { %279 = vmatpush3.msra.mxu0 %v136_v25  ;;  %322 = vmatpush3.msra.mxu1 %v136_v25 }
  0x40   :  { %280 = vmatprep.subr.mxu0 %v151_v26  ;;  %307 = vmatprep.subr.mxu1 %v151_v26 }
  0x41   :  { %281 = vmatpush3.msra.mxu0 %v135_v27  ;;  %323 = vmatpush3.msra.mxu1 %v135_v27 }
  0x42   :  { %282 = vmatprep.subr.mxu0 %v150_v28  ;;  %308 = vmatprep.subr.mxu1 %v150_v28 }
  0x43   :  { %283 = vmatpush3.msra.mxu0 %v134_v29  ;;  %324 = vmatpush3.msra.mxu1 %v134_v29 }
  0x44   :  { %284 = vmatprep.subr.mxu0 %v149_v30  ;;  %309 = vmatprep.subr.mxu1 %v149_v30 }
  0x45   :  { %285 = vmatpush3.msra.mxu0 %v133_v31  ;;  %325 = vmatpush3.msra.mxu1 %v133_v31 }
  0x46   :  { %286 = vmatprep.subr.mxu0 %v148_v32  ;;  %310 = vmatprep.subr.mxu1 %v148_v32 }
  0x47   :  { %287 = vmatpush3.msra.mxu0 %v132_v33  ;;  %326 = vmatpush3.msra.mxu1 %v132_v33 }
  0x48   :  { %288 = vmatprep.subr.mxu0 %v147_v34  ;;  %311 = vmatprep.subr.mxu1 %v147_v34 }
  0x49   :  { %289 = vmatpush3.msra.mxu0 %v131_v35  ;;  %327 = vmatpush3.msra.mxu1 %v131_v35 }
  0x9b   :  { %v71_v38 = vpop.permute.xlu1 %70  ;;  %v65_v39 = vpop.permute.xlu0 %64 }
  0x9c   :  { %v83_v45 = vsel %vm82_vm0, %v475_v3, %v65_v39 }
  0x9d   :  { %v86_v51 = vsel %vm85_vm1, %v83_v45, %v71_v38 }
  0x9f   :  { %v73_v43 = vpop.permute.xlu1 %72  ;;  %v67_v44 = vpop.permute.xlu0 %66 }
  0xa0   :  { %v84_v46 = vsel %vm82_vm0, %v479_v7, %v67_v44 }
  0xa1   :  { %v87_v50 = vsel %vm85_vm1, %v84_v46, %v73_v43 }
  0xa3   :  { %v79_v49 = vpop.permute.xlu1 %78  ;;  %v77_v52 = vpop.permute.xlu0 %76 }
  0xa4   :  { %v90_v53 = vsel %vm88_vm2, %v87_v50, %v79_v49  ;;  %v89_v54 = vsel %vm88_vm2, %v86_v51, %v77_v52 }
  0xa5   :  { %v105_v55 = vsub.f32 %v90_v53, %v96_v47  ;;  %v106_v56 = vsub.f32 %v90_v53, %v100_v48  ;;  %v103_v57 = vsub.f32 %v89_v54, %v96_v47  ;;  %v104_v58 = vsub.f32 %v89_v54, %v100_v48 }
  0xa7   :  { %v109_v59 = vmul.f32 %v105_v55, %v105_v55  ;;  %v110_v60 = vmul.f32 %v106_v56, %v106_v56  ;;  %v107_v61 = vmul.f32 %v103_v57, %v103_v57  ;;  %v108_v62 = vmul.f32 %v104_v58, %v104_v58 }
  0xa9   :  { %v113_v63 = vsub.f32 0.0, %v109_v59  ;;  %v114_v0 = vsub.f32 0.0, %v110_v60  ;;  %v111_v1 = vsub.f32 0.0, %v107_v61  ;;  %v112_v2 = vsub.f32 0.0, %v108_v62 }
  0xab   :  { %v119_v3 = vmul.f32 1.442695, %v113_v63  ;;  %v115_v4 = vmul.f32 1.442695, %v111_v1  ;;  %v117_v5 = vmul.f32 1.442695, %v112_v2 }
  0xac   :  { %v121_v6 = vmul.f32 1.442695, %v114_v0 }
  0xad   :  { %337 = vpow2.f32 %v119_v3 }
  0xae   :  { %339 = vpow2.f32 %v115_v4 }
  0xaf   :  { %341 = vpow2.f32 %v117_v5 }
  0xb0   :  { %343 = vpow2.f32 %v121_v6 }
  0xba   :  { %v338_v7 = vpop.eup %337 }
  0xbb   :  { %v340_v8 = vpop.eup %339 }
  0xbc   :  { %v342_v9 = vpop.eup %341 }
  0xbd   :  { %v344_v10 = vpop.eup %343  ;;  %227 = vmatprep.mubr.f32.mxu0 %v342_v9 }
  0xbe   :  { %232 = vmatprep.mubr.f32.mxu1 %v344_v10  ;;  %228 = vmatmul.mubr.f32.vlgmr.msra.gmra.mxu0 %v340_v8 }
  0xbf   :  { %233 = vmatmul.mubr.f32.vlgmr.msra.gmra.mxu1 %v338_v7 }
 0x17e   :  { %v290_v11 = vpop.f32.mrf.mxu0 }
 0x17f   :  { %v293_v12 = vpop.f32.mrf.mxu1 }
 0x180   :  { %v291_v13 = vpop.f32.mrf.mxu0 }
 0x181   :  { %v292_v14 = vadd.f32 %v291_v13, %v290_v11  ;;  %v294_v15 = vpop.f32.mrf.mxu1 }
 0x182   :  { %v295_v16 = vadd.f32 %v294_v15, %v293_v12 }
 0x183   :  { %238 = vst [vmem:[#allocation9] sm:$0xff] %v292_v14 }
 0x184   :  { %239 = vst [vmem:[#allocation9 + $0x8] sm:$0xff] %v295_v16 }
 0x185   :  { %416 = shalt.err (!%p413_p5)
}
 0x186   :  { %251 = dma.vmem_to_hbm [thread:$0]  %s246_s30, 256, %s496_s3, [#allocation5], %s433_s20, %s433_s20, %s434_s21  }
 0x187   :  { %429 = dma.done.wait [#allocation5], 256  }
 0x188   :  { %430 = vsyncadd [#allocation5], 4294967040 }
 0x189   :  { %255 = vsyncpa [#allocation4], 1 }
 0x18a   :  { %256 = vsyncpa [#allocation7], 1 }
 0x18b   :  { %257 = vsyncpa [#allocation5], 1 }

</bundles_post_ra>
